<compile_context>
chip_gen: v5e
topology: v5e:2x2
jax: 0.10.0
libtpu: 0.0.40
codegen_flags: <defaults>
</compile_context>

<pallas_src>
import functools

import jax
import jax.numpy as jnp
from jax.experimental import pallas as pl
from jax.experimental.pallas import tpu as pltpu


def _grid_sample2d_kernel(coords_ref, gidx_ref, fm_ref, out_ref, acc_ref, *, H, W):
    """One (query-tile i, grid-chunk k) step.

    coords_ref: (2, TN)         f32   row 0 = x (width axis), row 1 = y (height axis)
    gidx_ref:   (K_CHUNK, 2)    f32   col 0 = grid row index (i), col 1 = grid col index (j)
    fm_ref:     (fdim, K_CHUNK) compute dtype, flattened feature-grid chunk
    out_ref:    (fdim, TN)      f32   channel-major output tile (lane-dense)
    acc_ref:    (fdim, TN)      f32   VMEM accumulator across the K axis
    """
    @pl.when(pl.program_id(1) == 0)
    def _():
        acc_ref[...] = jnp.zeros_like(acc_ref)

    gx = coords_ref[0:1, :]                        # (1, TN)  x -> width
    gy = coords_ref[1:2, :]                        # (1, TN)  y -> height

    # align_corners=True unnormalization, then border clamp.
    ux = jnp.clip((gx + 1.0) * (0.5 * (W - 1)), 0.0, float(W - 1))
    uy = jnp.clip((gy + 1.0) * (0.5 * (H - 1)), 0.0, float(H - 1))

    gi = gidx_ref[:, 0:1]                          # (K_CHUNK, 1) grid row (height)
    gj = gidx_ref[:, 1:2]                          # (K_CHUNK, 1) grid col (width)

    wy = jnp.maximum(0.0, 1.0 - jnp.abs(uy - gi))  # (K_CHUNK, TN)
    wx = jnp.maximum(0.0, 1.0 - jnp.abs(ux - gj))  # (K_CHUNK, TN)
    w2 = (wy * wx).astype(fm_ref.dtype)            # bilinear weights, <=4 nonzero / query

    # (fdim, K_CHUNK) @ (K_CHUNK, TN) on the MXU, f32 accumulate.
    acc_ref[...] += jnp.dot(fm_ref[...], w2, preferred_element_type=jnp.float32)

    @pl.when(pl.program_id(1) == pl.num_programs(1) - 1)
    def _():
        out_ref[...] = acc_ref[...].astype(out_ref.dtype)


def feature_grid_forward_2d(fm, x_coords, *, tn=512, k_chunk=512,
                            compute_dtype=jnp.bfloat16):
    """fm: (1, fdim, fsize, fsize), x_coords: (1, H_out, W_out, 2) -> (H_out, W_out, fdim)."""
    _, fdim, H, W = fm.shape
    _, h_out, w_out, _ = x_coords.shape
    hw = H * W
    n = h_out * w_out

    # Tile sizes: multiples of 128, clamped so tiny inputs don't over-pad.
    tn = max(128, min(tn, pl.cdiv(n, 128) * 128))
    k_chunk = max(128, min(k_chunk, pl.cdiv(hw, 128) * 128))
    n_pad = pl.cdiv(n, tn) * tn
    hw_pad = pl.cdiv(hw, k_chunk) * k_chunk

    # Queries transposed -> lane-dense (2, N) blocks (row 0 = x, row 1 = y).
    coords_t = jnp.transpose(x_coords[0].reshape(n, 2), (1, 0)).astype(jnp.float32)
    coords_t = jnp.pad(coords_t, ((0, 0), (0, n_pad - n)))

    # Flattened feature grid in native channel-major layout (fdim, H*W).
    fm_flat = fm[0].reshape(fdim, hw)
    fm_flat = jnp.pad(fm_flat, ((0, 0), (0, hw_pad - hw))).astype(compute_dtype)

    # Precomputed grid-point index planes (done once, not per tile).
    m = jnp.arange(hw, dtype=jnp.int32)
    gidx = jnp.stack([(m // W).astype(jnp.float32),
                      (m % W).astype(jnp.float32)], axis=1)            # (hw, 2)
    # Pad with a far-away coordinate so padded grid points receive weight 0.
    gidx = jnp.pad(gidx, ((0, hw_pad - hw), (0, 0)), constant_values=-10.0)

    kernel = functools.partial(_grid_sample2d_kernel, H=H, W=W)
    out_cm = pl.pallas_call(
        kernel,
        out_shape=jax.ShapeDtypeStruct((fdim, n_pad), jnp.float32),
        grid_spec=pltpu.PrefetchScalarGridSpec(
            num_scalar_prefetch=0,
            grid=(n_pad // tn, hw_pad // k_chunk),   # (query tiles, reduction chunks)
            in_specs=[
                pl.BlockSpec((2, tn), lambda i, k: (0, i)),           # query coords tile
                pl.BlockSpec((k_chunk, 2), lambda i, k: (k, 0)),      # gi/gj index planes
                pl.BlockSpec((fdim, k_chunk), lambda i, k: (0, k)),   # feature-grid chunk
            ],
            out_specs=pl.BlockSpec((fdim, tn), lambda i, k: (0, i)),
            scratch_shapes=[pltpu.VMEM((fdim, tn), jnp.float32)],
        ),
        compiler_params=pltpu.CompilerParams(
            dimension_semantics=("parallel", "arbitrary"),
            vmem_limit_bytes=64 * 1024 * 1024,
        ),
    )(coords_t, gidx, fm_flat)

    # (fdim, N) channel-major -> (H_out, W_out, fdim), matching the PyTorch permute.
    return jnp.transpose(out_cm[:, :n], (1, 0)).reshape(h_out, w_out, fdim)


def _grid_sample2d_ref(fm, x_coords):
    """Pure-JAX gather-based reference for grid_sample(align_corners=True, border)."""
    _, fdim, H, W = fm.shape
    f = fm[0]                                      # (C, H, W)
    coords = x_coords[0].reshape(-1, 2)
    ux = jnp.clip((coords[:, 0] + 1.0) * 0.5 * (W - 1), 0.0, W - 1)
    uy = jnp.clip((coords[:, 1] + 1.0) * 0.5 * (H - 1), 0.0, H - 1)
    x0 = jnp.floor(ux).astype(jnp.int32)
    y0 = jnp.floor(uy).astype(jnp.int32)
    x1 = jnp.clip(x0 + 1, 0, W - 1)
    y1 = jnp.clip(y0 + 1, 0, H - 1)
    tx = ux - x0
    ty = uy - y0
    g = lambda yy, xx: f[:, yy, xx]                # (C, N)
    v = (g(y0, x0) * (1 - tx) * (1 - ty) + g(y0, x1) * tx * (1 - ty)
         + g(y1, x0) * (1 - tx) * ty + g(y1, x1) * tx * ty)
    h_out, w_out = x_coords.shape[1], x_coords.shape[2]
    return jnp.transpose(v, (1, 0)).reshape(h_out, w_out, fdim)


if __name__ == "__main__":
    fdim, fsize = 8, 16
    h_out, w_out = 16, 16

    key = jax.random.PRNGKey(0)
    k_fm, k_grid = jax.random.split(key)

    # Deterministic parameter init matching nn.Parameter(torch.randn(1, fdim, fsize, fsize)).
    fm = jax.random.normal(k_fm, (1, fdim, fsize, fsize), dtype=jnp.float32)
    # Query grid in roughly [-1.2, 1.2] to exercise the border clamp.
    x_coords = jax.random.uniform(k_grid, (1, h_out, w_out, 2),
                                  dtype=jnp.float32, minval=-1.2, maxval=1.2)

    ref = _grid_sample2d_ref(fm, x_coords)

    # f32 compute path: exact match to the reference.
    out_f32 = jax.block_until_ready(
        feature_grid_forward_2d(fm, x_coords, compute_dtype=jnp.float32))
    assert out_f32.shape == (h_out, w_out, fdim), out_f32.shape
    assert jnp.allclose(out_f32, ref, atol=1e-5, rtol=1e-5), \
        float(jnp.max(jnp.abs(out_f32 - ref)))

    # Default bf16-MXU path: tolerance relaxed for bf16 feature/weight rounding.
    out_bf16 = jax.block_until_ready(feature_grid_forward_2d(fm, x_coords))
    assert out_bf16.shape == (h_out, w_out, fdim), out_bf16.shape
    assert jnp.allclose(out_bf16, ref, atol=5e-2, rtol=5e-2), \
        float(jnp.max(jnp.abs(out_bf16 - ref)))

    print("KERNEL_OK")
</pallas_src>

<mosaic_0001>
module attributes {stable_mosaic.version = 11 : i64} {
  func.func @_grid_sample2d_kernel(%arg0: i32, %arg1: i32, %arg2: memref<2x256xf32, #tpu.memory_space<vmem>>, %arg3: memref<256x2xf32, #tpu.memory_space<vmem>>, %arg4: memref<8x256xf32, #tpu.memory_space<vmem>>, %arg5: memref<8x256xf32, #tpu.memory_space<vmem>>, %arg6: memref<8x256xf32, #tpu.memory_space<vmem>>) attributes {dimension_semantics = [#tpu.dimension_semantics<parallel>, #tpu.dimension_semantics<arbitrary>], iteration_bounds = array<i64: 1, 1>, scalar_prefetch = 0 : i64, scratch_operands = 1 : i64, tpu.core_type = #tpu.core_type<tc>, window_params = [{transform_indices = @transform_0, window_bounds = array<i64: 2, 256>}, {transform_indices = @transform_1, window_bounds = array<i64: 256, 2>}, {transform_indices = @transform_2, window_bounds = array<i64: 8, 256>}, {transform_indices = @transform_3, window_bounds = array<i64: 8, 256>}]} {
    %c0_i32 = arith.constant 0 : i32
    %0 = arith.cmpi eq, %arg1, %c0_i32 : i32
    %1 = arith.extui %0 : i1 to i32
    %c0_i32_0 = arith.constant 0 : i32
    %2 = arith.cmpi ne, %1, %c0_i32_0 : i32
    scf.if %2 {
      %cst_27 = arith.constant 0.000000e+00 : f32
      %48 = vector.broadcast %cst_27 : f32 to vector<8x256xf32>
      %c0_28 = arith.constant 0 : index
      %c0_29 = arith.constant 0 : index
      %49 = vector.load %arg6[%c0_28, %c0_29] : memref<8x256xf32, #tpu.memory_space<vmem>>, vector<8x256xf32>
      tpu.vector_store %arg6[%c0_28, %c0_29], %48 {strides = array<i32>} : memref<8x256xf32, #tpu.memory_space<vmem>>, vector<8x256xf32>,
    } else {
    }
    %c0 = arith.constant 0 : index
    %c0_1 = arith.constant 0 : index
    %3 = vector.load %arg2[%c0, %c0_1] : memref<2x256xf32, #tpu.memory_space<vmem>>, vector<1x256xf32>
    %c1 = arith.constant 1 : index
    %c0_2 = arith.constant 0 : index
    %4 = vector.load %arg2[%c1, %c0_2] : memref<2x256xf32, #tpu.memory_space<vmem>>, vector<1x256xf32>
    %cst = arith.constant 1.000000e+00 : f32
    %5 = vector.broadcast %cst : f32 to vector<1x256xf32>
    %6 = arith.addf %3, %5 : vector<1x256xf32>
    %cst_3 = arith.constant 7.500000e+00 : f32
    %7 = vector.broadcast %cst_3 : f32 to vector<1x256xf32>
    %8 = arith.mulf %6, %7 : vector<1x256xf32>
    %cst_4 = arith.constant 0.000000e+00 : f32
    %cst_5 = arith.constant 1.500000e+01 : f32
    %9 = vector.broadcast %cst_4 : f32 to vector<1x256xf32>
    %10 = arith.maximumf %9, %8 : vector<1x256xf32>
    %11 = vector.broadcast %cst_5 : f32 to vector<1x256xf32>
    %12 = arith.minimumf %11, %10 : vector<1x256xf32>
    %cst_6 = arith.constant 1.000000e+00 : f32
    %13 = vector.broadcast %cst_6 : f32 to vector<1x256xf32>
    %14 = arith.addf %4, %13 : vector<1x256xf32>
    %cst_7 = arith.constant 7.500000e+00 : f32
    %15 = vector.broadcast %cst_7 : f32 to vector<1x256xf32>
    %16 = arith.mulf %14, %15 : vector<1x256xf32>
    %cst_8 = arith.constant 0.000000e+00 : f32
    %cst_9 = arith.constant 1.500000e+01 : f32
    %17 = vector.broadcast %cst_8 : f32 to vector<1x256xf32>
    %18 = arith.maximumf %17, %16 : vector<1x256xf32>
    %19 = vector.broadcast %cst_9 : f32 to vector<1x256xf32>
    %20 = arith.minimumf %19, %18 : vector<1x256xf32>
    %c0_10 = arith.constant 0 : index
    %c0_11 = arith.constant 0 : index
    %21 = vector.load %arg3[%c0_10, %c0_11] : memref<256x2xf32, #tpu.memory_space<vmem>>, vector<256x1xf32>
    %c0_12 = arith.constant 0 : index
    %c1_13 = arith.constant 1 : index
    %22 = vector.load %arg3[%c0_12, %c1_13] : memref<256x2xf32, #tpu.memory_space<vmem>>, vector<256x1xf32>
    %23 = vector.broadcast %20 : vector<1x256xf32> to vector<256x256xf32>
    %24 = vector.broadcast %21 : vector<256x1xf32> to vector<256x256xf32>
    %25 = arith.subf %23, %24 : vector<256x256xf32>
    %26 = math.absf %25 : vector<256x256xf32>
    %cst_14 = arith.constant 1.000000e+00 : f32
    %27 = vector.broadcast %cst_14 : f32 to vector<256x256xf32>
    %28 = arith.subf %27, %26 : vector<256x256xf32>
    %cst_15 = arith.constant 0.000000e+00 : f32
    %29 = vector.broadcast %cst_15 : f32 to vector<256x256xf32>
    %30 = arith.maximumf %29, %28 : vector<256x256xf32>
    %31 = vector.broadcast %12 : vector<1x256xf32> to vector<256x256xf32>
    %32 = vector.broadcast %22 : vector<256x1xf32> to vector<256x256xf32>
    %33 = arith.subf %31, %32 : vector<256x256xf32>
    %34 = math.absf %33 : vector<256x256xf32>
    %cst_16 = arith.constant 1.000000e+00 : f32
    %35 = vector.broadcast %cst_16 : f32 to vector<256x256xf32>
    %36 = arith.subf %35, %34 : vector<256x256xf32>
    %cst_17 = arith.constant 0.000000e+00 : f32
    %37 = vector.broadcast %cst_17 : f32 to vector<256x256xf32>
    %38 = arith.maximumf %37, %36 : vector<256x256xf32>
    %39 = arith.mulf %30, %38 : vector<256x256xf32>
    %c0_18 = arith.constant 0 : index
    %c0_19 = arith.constant 0 : index
    %40 = vector.load %arg6[%c0_18, %c0_19] : memref<8x256xf32, #tpu.memory_space<vmem>>, vector<8x256xf32>
    %c0_20 = arith.constant 0 : index
    %c0_21 = arith.constant 0 : index
    %41 = vector.load %arg4[%c0_20, %c0_21] : memref<8x256xf32, #tpu.memory_space<vmem>>, vector<8x256xf32>
    %cst_22 = arith.constant dense<0.000000e+00> : vector<8x256xf32>
    %42 = tpu.matmul %41, %39, %cst_22 {dimension_numbers = #tpu.dot_dimension_numbers<[1], [0], [0], [1], [0, 0, 1, 1], [], []>} : vector<8x256xf32>, vector<256x256xf32>, vector<8x256xf32> -> vector<8x256xf32>
    %43 = arith.addf %40, %42 : vector<8x256xf32>
    %c0_23 = arith.constant 0 : index
    %c0_24 = arith.constant 0 : index
    %44 = vector.load %arg6[%c0_23, %c0_24] : memref<8x256xf32, #tpu.memory_space<vmem>>, vector<8x256xf32>
    tpu.vector_store %arg6[%c0_23, %c0_24], %43 {strides = array<i32>} : memref<8x256xf32, #tpu.memory_space<vmem>>, vector<8x256xf32>,
    %c0_i32_25 = arith.constant 0 : i32
    %45 = arith.cmpi eq, %arg1, %c0_i32_25 : i32
    %46 = arith.extui %45 : i1 to i32
    %c0_i32_26 = arith.constant 0 : i32
    %47 = arith.cmpi ne, %46, %c0_i32_26 : i32
    scf.if %47 {
      %c0_27 = arith.constant 0 : index
      %c0_28 = arith.constant 0 : index
      %48 = vector.load %arg6[%c0_27, %c0_28] : memref<8x256xf32, #tpu.memory_space<vmem>>, vector<8x256xf32>
      %c0_29 = arith.constant 0 : index
      %c0_30 = arith.constant 0 : index
      %49 = vector.load %arg5[%c0_29, %c0_30] : memref<8x256xf32, #tpu.memory_space<vmem>>, vector<8x256xf32>
      tpu.vector_store %arg5[%c0_29, %c0_30], %48 {strides = array<i32>} : memref<8x256xf32, #tpu.memory_space<vmem>>, vector<8x256xf32>,
    } else {
    }
    return
  }
  func.func @transform_0(%arg0: i32, %arg1: i32) -> (i32, i32) {
    %c0_i32 = arith.constant 0 : i32
    %c0_i32_0 = arith.constant 0 : i32
    return %c0_i32, %arg0 : i32, i32
  }
  func.func @transform_1(%arg0: i32, %arg1: i32) -> (i32, i32) {
    %c0_i32 = arith.constant 0 : i32
    %c0_i32_0 = arith.constant 0 : i32
    return %arg1, %c0_i32 : i32, i32
  }
  func.func @transform_2(%arg0: i32, %arg1: i32) -> (i32, i32) {
    %c0_i32 = arith.constant 0 : i32
    %c0_i32_0 = arith.constant 0 : i32
    return %c0_i32, %arg1 : i32, i32
  }
  func.func @transform_3(%arg0: i32, %arg1: i32) -> (i32, i32) {
    %c0_i32 = arith.constant 0 : i32
    %c0_i32_0 = arith.constant 0 : i32
    return %c0_i32, %arg0 : i32, i32
  }
}

</mosaic_0001>

<bundles_post_ra>
// kernel: tpu_custom_call.1
= control target key start
LH: loop header
LB: loop body
LE: loop exit
PB: predicated region body
PF: predicated region fallthrough
CT: control target
= control target key end

     0   :  { %v1085_v3 = vmov 0   ;;  %s1733_s0 = inlined_call_operand.vmem [shape: f32[2,256], index: 0, kind: input, shape index: {}]   ;;  %s1734_s1 = inlined_call_operand.vmem [shape: f32[256,2], index: 1, kind: input, shape index: {}]   ;;  %s1735_s2 = inlined_call_operand.vmem [shape: f32[8,256], index: 2, kind: input, shape index: {}]   ;;  %s1736_s3 = inlined_call_operand.hbm [shape: f32[8,256], index: 3, kind: output, shape index: {}]  }
   0x1   :  { %v1111_v0 = vld [vmem:[%s1734_s1 + $0x20] sm:$0xff]  ;;  %v1116_v1 = vld [vmem:[%s1734_s1 + $0x10] sm:$0xff]  ;;  %1055 = vset.pattern.permute.xlu2 %v1085_v3  ;;  %1054 = vset.pattern.permute.xlu1 %v1085_v3 }
   0x2   :  { %v1121_v2 = vld [vmem:[%s1734_s1] sm:$0xff]  ;;  %1053 = vset.pattern.permute.xlu0 %v1085_v3  ;;  %91 = vperm.xlu2 %1055, %v1111_v0  }
   0x3   :  { %81 = vperm.xlu1 %1054, %v1116_v1   ;;  %71 = vperm.xlu0 %1053, %v1121_v2  }
   0x4   :  { %8 = vsyncpa [#allocation4], 0  ;;  %v1129_v4 = vld [vmem:[%s1734_s1 + $0x28] sm:$0xff]  ;;  %v1134_v5 = vld [vmem:[%s1734_s1 + $0x18] sm:$0xff]  ;;  %v1086_v33 = vmov 1   ;;  %s1087_s28 = smov [#allocation3]  }
   0x5   :  { %v1139_v6 = vld [vmem:[%s1734_s1 + $0x8] sm:$0xff]  ;;  %v1147_v7 = vld [vmem:[%s1734_s1 + $0x40] sm:$0xff]  ;;  %v1152_v8 = vld [vmem:[%s1734_s1 + $0x38] sm:$0xff]  ;;  %s1038_s29 = sshll.u32 %s1087_s28, 4  ;;  %s1040_s5 = sshll.u32 %s1736_s3, 4  ;;  %s1039_s29 = int_to_ptr.vmem [resolvable:$true] %s1038_s29  ;;  %s1041_s5 = int_to_ptr.hbm [resolvable:$true] %s1040_s5 }
   0x6   :  { %v1157_v9 = vld [vmem:[%s1734_s1 + $0x30] sm:$0xff]  ;;  %v43_v10 = vld [vmem:[%s1734_s1 + $0x58] sm:$0xff]  ;;  %v1171_v12 = vld [vmem:[%s1734_s1 + $0x48] sm:$0xff] }
   0x7   :  { %v42_v11 = vld [vmem:[%s1734_s1 + $0x50] sm:$0xff]  ;;  %v45_v14 = vld [vmem:[%s1734_s1 + $0x68] sm:$0xff]  ;;  %v44_v15 = vld [vmem:[%s1734_s1 + $0x60] sm:$0xff] }
   0x8   :  { %v46_v13 = vld [vmem:[%s1734_s1 + $0x70] sm:$0xff]  ;;  %v1186_v16 = vld [vmem:[%s1734_s1 + $0x88] sm:$0xff]  ;;  %v1191_v17 = vld [vmem:[%s1734_s1 + $0x80] sm:$0xff] }
   0x9   :  { %v47_v18 = vld [vmem:[%s1734_s1 + $0x78] sm:$0xff]  ;;  %v1201_v19 = vld [vmem:[%s1734_s1 + $0xa0] sm:$0xff]  ;;  %v1211_v21 = vld [vmem:[%s1734_s1 + $0x90] sm:$0xff] }
   0xa   :  { %96 = vperm.xlu2 %1055, %v1129_v4   ;;  %v1206_v20 = vld [vmem:[%s1734_s1 + $0x98] sm:$0xff]  ;;  %v54_v23 = vld [vmem:[%s1734_s1 + $0xb0] sm:$0xff]  ;;  %v1227_v24 = vld [vmem:[%s1734_s1 + $0xa8] sm:$0xff] }
   0xb   :  { %86 = vperm.xlu1 %1054, %v1134_v5   ;;  %76 = vperm.xlu0 %1053, %v1139_v6   ;;  %v1219_v22 = vld [vmem:[%s1734_s1 + $0xb8] sm:$0xff]  ;;  %v58_v25 = vld [vmem:[%s1734_s1 + $0xd0] sm:$0xff]  ;;  %v57_v26 = vld [vmem:[%s1734_s1 + $0xc8] sm:$0xff] }
   0xc   :  { %v56_v27 = vld [vmem:[%s1734_s1 + $0xc0] sm:$0xff]  ;;  %v63_v28 = vld [vmem:[%s1734_s1 + $0xf8] sm:$0xff]  ;;  %v62_v31 = vld [vmem:[%s1734_s1 + $0xf0] sm:$0xff] }
   0xd   :  { %v60_v29 = vld [vmem:[%s1734_s1 + $0xe0] sm:$0xff]  ;;  %v59_v30 = vld [vmem:[%s1734_s1 + $0xd8] sm:$0xff]  ;;  %v61_v32 = vld [vmem:[%s1734_s1 + $0xe8] sm:$0xff] }
   0xe   :  { %v1049_v40 = vld [vmem:[%s1733_s0 + $0x1] ss:$2 sm:$0x3] }
   0xf   :  { %v28_v41 = vadd.f32 1.0, %v1049_v40 }
  0x11   :  { %v29_v45 = vmul.f32 7.5, %v28_v41 }
  0x12   :  { %111 = vperm.xlu2 %1055, %v1147_v7  }
  0x13   :  { %106 = vperm.xlu1 %1054, %v1152_v8   ;;  %101 = vperm.xlu0 %1053, %v1157_v9   ;;  %v30_v46 = vmax.f32 %v29_v45, 0.0 }
  0x15   :  { %v31_v50 = vmin.f32 %v30_v46, 15.0 }
  0x17   :  { %v1277_v51 = vperm.slane %v31_v50, 0  ;;  %v1283_v53 = vperm.slane %v31_v50, 1 }
  0x1a   :  { %126 = vperm.xlu2 %1055, %v43_v10  }
  0x1b   :  { %121 = vperm.xlu1 %1054, %v42_v11   ;;  %116 = vperm.xlu0 %1053, %v1171_v12  }
  0x22   :  { %141 = vperm.xlu2 %1055, %v46_v13  }
  0x23   :  { %136 = vperm.xlu1 %1054, %v45_v14   ;;  %131 = vperm.xlu0 %1053, %v44_v15  }
  0x2a   :  { %156 = vperm.xlu2 %1055, %v1186_v16  }
  0x2b   :  { %151 = vperm.xlu1 %1054, %v1191_v17   ;;  %146 = vperm.xlu0 %1053, %v47_v18  }
  0x32   :  { %171 = vperm.xlu2 %1055, %v1201_v19  }
  0x33   :  { %166 = vperm.xlu1 %1054, %v1206_v20   ;;  %161 = vperm.xlu0 %1053, %v1211_v21  }
  0x3a   :  { %186 = vperm.xlu2 %1055, %v1219_v22  }
  0x3b   :  { %181 = vperm.xlu1 %1054, %v54_v23   ;;  %176 = vperm.xlu0 %1053, %v1227_v24  }
  0x42   :  { %201 = vperm.xlu2 %1055, %v58_v25  }
  0x43   :  { %196 = vperm.xlu1 %1054, %v57_v26   ;;  %191 = vperm.xlu0 %1053, %v56_v27  }
  0x4a   :  { %226 = vperm.xlu2 %1055, %v63_v28  }
  0x4b   :  { %211 = vperm.xlu1 %1054, %v60_v29   ;;  %206 = vperm.xlu0 %1053, %v59_v30  }
  0x52   :  { %221 = vperm.xlu2 %1055, %v62_v31  }
  0x53   :  { %1056 = vset.pattern.permute.xlu1 %v1086_v33  ;;  %216 = vperm.xlu0 %1053, %v61_v32  }
  0x54   :  { %615 = vperm.xlu1 %1056, %v63_v28  }
  0x5a   :  { %1057 = vset.pattern.permute.xlu2 %v1086_v33 }
  0x5b   :  { %1058 = vset.pattern.permute.xlu0 %v1086_v33  ;;  %611 = vperm.xlu2 %1057, %v62_v31  }
  0x5c   :  { %547 = vperm.xlu1 %1056, %v46_v13   ;;  %551 = vperm.xlu0 %1058, %v47_v18   ;;  %v92_v34 = vpop.permute.xlu2 %91 }
  0x5d   :  { %v237_v56 = vsub.f32 %v1277_v51, %v92_v34  ;;  %v238_v57 = vsub.f32 %v1283_v53, %v92_v34 }
  0x5f   :  { %v301_v60 = vand.u32 2147483647, %v237_v56  ;;  %v302_v62 = vand.u32 2147483647, %v238_v57 }
  0x63   :  { %607 = vperm.xlu2 %1057, %v61_v32  }
  0x64   :  { %543 = vperm.xlu1 %1056, %v45_v14   ;;  %535 = vperm.xlu0 %1058, %v43_v10   ;;  %v97_v35 = vpop.permute.xlu2 %96  ;;  %v365_v10 = vsub.f32 1.0, %v301_v60  ;;  %v366_v14 = vsub.f32 1.0, %v302_v62 }
  0x65   :  { %v239_v58 = vsub.f32 %v1277_v51, %v97_v35  ;;  %v240_v59 = vsub.f32 %v1283_v53, %v97_v35 }
  0x66   :  { %v1314_v28 = vmax.f32 %v366_v14, 0.0 }
  0x67   :  { %v303_v3 = vand.u32 2147483647, %v239_v58 }
  0x68   :  { %1743 = vst [vmem:[#allocation8_spill] sm:$0xff] %v1314_v28 }
  0x6b   :  { %603 = vperm.xlu2 %1057, %v60_v29  }
  0x6c   :  { %539 = vperm.xlu1 %1056, %v44_v15   ;;  %591 = vperm.xlu0 %1058, %v57_v26   ;;  %v112_v36 = vpop.permute.xlu2 %111 }
  0x6d   :  { %v245_v61 = vsub.f32 %v1277_v51, %v112_v36  ;;  %v246_v63 = vsub.f32 %v1283_v53, %v112_v36 }
  0x73   :  { %531 = vperm.xlu2 %1057, %v42_v11   ;;  %v309_v11 = vand.u32 2147483647, %v245_v61 }
  0x74   :  { %599 = vperm.xlu1 %1056, %v59_v30   ;;  %519 = vperm.xlu0 %1058, %v1152_v8   ;;  %v127_v37 = vpop.permute.xlu2 %126 }
  0x75   :  { %v82_v38 = vpop.permute.xlu1 %81  ;;  %v1256_v39 = vpop.permute.xlu0 %71  ;;  %v252_v13 = vsub.f32 %v1283_v53, %v127_v37 }
  0x76   :  { %v233_v15 = vsub.f32 %v1277_v51, %v82_v38  ;;  %v229_v18 = vsub.f32 %v1277_v51, %v1256_v39 }
  0x78   :  { %v297_v29 = vand.u32 2147483647, %v233_v15  ;;  %v293_v33 = vand.u32 2147483647, %v229_v18 }
  0x7a   :  { %v361_v46 = vsub.f32 1.0, %v297_v29 }
  0x7b   :  { %527 = vperm.xlu2 %1057, %v1171_v12   ;;  %v251_v12 = vsub.f32 %v1277_v51, %v127_v37 }
  0x7c   :  { %595 = vperm.xlu1 %1056, %v58_v25   ;;  %579 = vperm.xlu0 %1058, %v54_v23   ;;  %v1262_v42 = vpop.permute.xlu2 %141  ;;  %v373_v25 = vsub.f32 1.0, %v309_v11 }
  0x7d   :  { %v1264_v43 = vpop.permute.xlu1 %86  ;;  %v1266_v44 = vpop.permute.xlu0 %76  ;;  %v315_v26 = vand.u32 2147483647, %v251_v12  ;;  %v257_v31 = vsub.f32 %v1277_v51, %v1262_v42  ;;  %v258_v35 = vsub.f32 %v1283_v53, %v1262_v42  ;;  %v1355_v12 = vmax.f32 %v361_v46, 0.0 }
  0x7e   :  { %v1337_v42 = vmax.f32 %v373_v25, 0.0  ;;  %v231_v45 = vsub.f32 %v1277_v51, %v1266_v44  ;;  %v232_v57 = vsub.f32 %v1283_v53, %v1266_v44 }
  0x7f   :  { %v321_v56 = vand.u32 2147483647, %v257_v31  ;;  %v322_v60 = vand.u32 2147483647, %v258_v35  ;;  %1749 = vst [vmem:[#allocation14_spill] sm:$0xff] %v1355_v12 }
  0x80   :  { %1747 = vst [vmem:[#allocation12_spill] sm:$0xff] %v1337_v42  ;;  %v295_v11 = vand.u32 2147483647, %v231_v45  ;;  %v296_v15 = vand.u32 2147483647, %v232_v57 }
  0x81   :  { %v385_v14 = vsub.f32 1.0, %v321_v56  ;;  %v21_v31 = vld [vmem:[%s1733_s0] ss:$2 sm:$0x3] }
  0x82   :  { %v24_v46 = vadd.f32 1.0, %v21_v31 }
  0x83   :  { %587 = vperm.xlu2 %1057, %v56_v27   ;;  %v316_v27 = vand.u32 2147483647, %v252_v13 }
  0x84   :  { %523 = vperm.xlu1 %1056, %v1147_v7   ;;  %507 = vperm.xlu0 %1058, %v1111_v0   ;;  %v1270_v47 = vpop.permute.xlu2 %156  ;;  %v304_v7 = vand.u32 2147483647, %v240_v59 }
  0x85   :  { %1741 = vst [vmem:[#allocation6_spill] sm:$0xff] %v1270_v47  ;;  %v1272_v48 = vpop.permute.xlu1 %106  ;;  %v1274_v49 = vpop.permute.xlu0 %101 }
  0x86   :  { %v368_v23 = vsub.f32 1.0, %v304_v7  ;;  %v241_v44 = vsub.f32 %v1277_v51, %v1274_v49  ;;  %v242_v18 = vsub.f32 %v1283_v53, %v1274_v49  ;;  %v360_v49 = vsub.f32 1.0, %v296_v15 }
  0x88   :  { %v306_v35 = vand.u32 2147483647, %v242_v18 }
  0x8b   :  { %515 = vperm.xlu2 %1057, %v1157_v9  }
  0x8c   :  { %583 = vperm.xlu1 %1056, %v1219_v22   ;;  %567 = vperm.xlu0 %1058, %v1206_v20   ;;  %v1281_v52 = vpop.permute.xlu2 %171  ;;  %v230_v20 = vsub.f32 %v1283_v53, %v1256_v39  ;;  %v367_v22 = vsub.f32 1.0, %v303_v3  ;;  %v235_v39 = vsub.f32 %v1277_v51, %v1264_v43  ;;  %v244_v3 = vsub.f32 %v1283_v53, %v1272_v48 }
  0x8d   :  { %v1285_v54 = vpop.permute.xlu1 %121  ;;  %v1287_v55 = vpop.permute.xlu0 %116 }
  0x8e   :  { %v294_v34 = vand.u32 2147483647, %v230_v20  ;;  %v1325_v37 = vmax.f32 %v367_v22, 0.0  ;;  %v299_v61 = vand.u32 2147483647, %v235_v39  ;;  %v249_v39 = vsub.f32 %v1277_v51, %v1285_v54 }
  0x8f   :  { %v247_v45 = vsub.f32 %v1277_v51, %v1287_v55 }
  0x90   :  { %1744 = vst [vmem:[#allocation9_spill] sm:$0xff] %v1325_v37  ;;  %v358_v59 = vsub.f32 1.0, %v294_v34  ;;  %v363_v22 = vsub.f32 1.0, %v299_v61 }
  0x93   :  { %575 = vperm.xlu2 %1057, %v1227_v24   ;;  %v1312_v24 = vmax.f32 %v365_v10, 0.0 }
  0x94   :  { %511 = vperm.xlu1 %1056, %v1129_v4   ;;  %495 = vperm.xlu0 %1058, %v1139_v6   ;;  %v1298_v0 = vpop.permute.xlu2 %186  ;;  %v234_v4 = vsub.f32 %v1283_v53, %v82_v38  ;;  %v310_v6 = vand.u32 2147483647, %v246_v63  ;;  %v1327_v38 = vmax.f32 %v368_v23, 0.0  ;;  %v243_v63 = vsub.f32 %v1277_v51, %v1272_v48 }
  0x95   :  { %v1300_v8 = vpop.permute.xlu1 %136  ;;  %v1302_v9 = vpop.permute.xlu0 %131  ;;  %1742 = vst [vmem:[#allocation7_spill] sm:$0xff] %v1312_v24  ;;  %v386_v48 = vsub.f32 1.0, %v322_v60  ;;  %v275_v15 = vsub.f32 %v1277_v51, %v1298_v0 }
  0x96   :  { %v298_v30 = vand.u32 2147483647, %v234_v4  ;;  %v374_v32 = vsub.f32 1.0, %v310_v6  ;;  %1745 = vst [vmem:[#allocation10_spill] sm:$0xff] %v1327_v38  ;;  %v1362_v6 = vmax.f32 %v358_v59, 0.0 }
  0x97   :  { %v307_v25 = vand.u32 2147483647, %v243_v63  ;;  %v1382_v34 = vmax.f32 %v386_v48, 0.0  ;;  %v313_v63 = vand.u32 2147483647, %v249_v39 }
  0x98   :  { %v362_v50 = vsub.f32 1.0, %v298_v30  ;;  %v1343_v58 = vmax.f32 %v374_v32, 0.0  ;;  %1752 = vst [vmem:[#allocation17_spill] sm:$0xff] %v1362_v6  ;;  %v305_v30 = vand.u32 2147483647, %v241_v44  ;;  %v1376_v32 = vmax.f32 %v385_v14, 0.0 }
  0x99   :  { %v311_v14 = vand.u32 2147483647, %v247_v45  ;;  %v339_v39 = vand.u32 2147483647, %v275_v15 }
  0x9a   :  { %1748 = vst [vmem:[#allocation13_spill] sm:$0xff] %v1343_v58  ;;  %v1357_v13 = vmax.f32 %v362_v50, 0.0  ;;  %v369_v57 = vsub.f32 1.0, %v305_v30  ;;  %v256_v30 = vsub.f32 %v1283_v53, %v1300_v8 }
  0x9b   :  { %503 = vperm.xlu2 %1057, %v1134_v5   ;;  %v236_v5 = vsub.f32 %v1283_v53, %v1264_v43  ;;  %v357_v43 = vsub.f32 1.0, %v293_v33  ;;  %v270_v33 = vsub.f32 %v1283_v53, %v1281_v52 }
  0x9c   :  { %571 = vperm.xlu1 %1056, %v1201_v19   ;;  %555 = vperm.xlu0 %1058, %v1191_v17   ;;  %v1323_v36 = vpop.permute.xlu2 %201  ;;  %v379_v19 = vsub.f32 1.0, %v315_v26  ;;  %v380_v17 = vsub.f32 1.0, %v316_v27  ;;  %1750 = vst [vmem:[#allocation15_spill] sm:$0xff] %v1357_v13  ;;  %v308_v26 = vand.u32 2147483647, %v244_v3 }
  0x9d   :  { %v1333_v40 = vpop.permute.xlu1 %151  ;;  %v1335_v41 = vpop.permute.xlu0 %146  ;;  %v300_v62 = vand.u32 2147483647, %v236_v5  ;;  %v1360_v4 = vmax.f32 %v357_v43, 0.0  ;;  %v250_v5 = vsub.f32 %v1283_v53, %v1285_v54  ;;  %v1396_v43 = vmax.f32 %v360_v49, 0.0 }
  0x9e   :  { %1746 = vst [vmem:[#allocation11_spill] sm:$0xff] %v1333_v40  ;;  %v1349_v7 = vmax.f32 %v379_v19, 0.0  ;;  %v1351_v10 = vmax.f32 %v380_v17, 0.0  ;;  %v1388_v19 = vmax.f32 %v363_v22, 0.0  ;;  %v371_v17 = vsub.f32 1.0, %v307_v25 }
  0x9f   :  { %1751 = vst [vmem:[#allocation16_spill] sm:$0xff] %v1360_v4  ;;  %v364_v23 = vsub.f32 1.0, %v300_v62  ;;  %v334_v60 = vand.u32 2147483647, %v270_v33  ;;  %v248_v54 = vsub.f32 %v1283_v53, %v1287_v55  ;;  %v370_v62 = vsub.f32 1.0, %v306_v35 }
  0xa0   :  { %1753 = vst [vmem:[#allocation18_spill] sm:$0xff] %v1388_v19  ;;  %v314_v3 = vand.u32 2147483647, %v250_v5  ;;  %v1406_v44 = vmax.f32 %v371_v17, 0.0  ;;  %v1416_v22 = vmax.f32 %v369_v57, 0.0  ;;  %v377_v49 = vsub.f32 1.0, %v313_v63 }
  0xa1   :  { %v1392_v50 = vmax.f32 %v364_v23, 0.0  ;;  %1756 = vst [vmem:[#allocation21_spill] sm:$0xff] %v1396_v43  ;;  %v255_v23 = vsub.f32 %v1277_v51, %v1300_v8  ;;  %v1424_v31 = vmax.f32 %v370_v62, 0.0  ;;  %v253_v33 = vsub.f32 %v1277_v51, %v1302_v9 }
  0xa2   :  { %1757 = vst [vmem:[#allocation22_spill] sm:$0xff] %v1406_v44  ;;  %v375_v35 = vsub.f32 1.0, %v311_v14  ;;  %v282_v8 = vsub.f32 %v1283_v53, %v1323_v36  ;;  %v260_v63 = vsub.f32 %v1283_v53, %v1335_v41  ;;  %v403_v14 = vsub.f32 1.0, %v339_v39 }
  0xa3   :  { %563 = vperm.xlu2 %1057, %v1211_v21   ;;  %v359_v21 = vsub.f32 1.0, %v295_v11  ;;  %1754 = vst [vmem:[#allocation19_spill] sm:$0xff] %v1392_v50  ;;  %v319_v45 = vand.u32 2147483647, %v255_v23  ;;  %v317_v62 = vand.u32 2147483647, %v253_v33 }
  0xa4   :  { %499 = vperm.xlu1 %1056, %v1116_v1   ;;  %v1367_v20 = vpop.permute.xlu2 %226  ;;  %v269_v1 = vsub.f32 %v1277_v51, %v1281_v52  ;;  %v372_v52 = vsub.f32 1.0, %v308_v26  ;;  %1759 = vst [vmem:[#allocation24_spill] sm:$0xff] %v1416_v22  ;;  %v398_v26 = vsub.f32 1.0, %v334_v60  ;;  %v320_v60 = vand.u32 2147483647, %v256_v30 }
  0xa5   :  { %v1369_v27 = vpop.permute.xlu1 %166  ;;  %v1371_v29 = vpop.permute.xlu0 %161  ;;  %v1394_v56 = vmax.f32 %v359_v21, 0.0  ;;  %v312_v21 = vand.u32 2147483647, %v248_v54  ;;  %1760 = vst [vmem:[#allocation25_spill] sm:$0xff] %v1424_v31  ;;  %v1438_v54 = vmax.f32 %v377_v49, 0.0  ;;  %v1450_v49 = vmax.f32 %v375_v35, 0.0 }
  0xa6   :  { %v333_v59 = vand.u32 2147483647, %v269_v1  ;;  %v1414_v18 = vmax.f32 %v372_v52, 0.0  ;;  %v378_v1 = vsub.f32 1.0, %v314_v3  ;;  %v1436_v57 = vmax.f32 %v398_v26, 0.0 }
  0xa7   :  { %1755 = vst [vmem:[#allocation20_spill] sm:$0xff] %v1394_v56  ;;  %v384_v33 = vsub.f32 1.0, %v320_v60  ;;  %v324_v6 = vand.u32 2147483647, %v260_v63 }
  0xa8   :  { %1758 = vst [vmem:[#allocation23_spill] sm:$0xff] %v1414_v18  ;;  %v397_v25 = vsub.f32 1.0, %v333_v59  ;;  %v376_v59 = vsub.f32 1.0, %v312_v21  ;;  %v1444_v3 = vmax.f32 %v378_v1, 0.0  ;;  %v346_v21 = vand.u32 2147483647, %v282_v8 }
  0xa9   :  { %1762 = vst [vmem:[#allocation27_spill] sm:$0xff] %v1436_v57  ;;  %v292_v1 = vsub.f32 %v1283_v53, %v1367_v20  ;;  %v1468_v43 = vmax.f32 %v384_v33, 0.0 }
  0xaa   :  { %v1434_v52 = vmax.f32 %v397_v25, 0.0  ;;  %v383_v25 = vsub.f32 1.0, %v319_v45  ;;  %v1456_v39 = vmax.f32 %v376_v59, 0.0  ;;  %v410_v4 = vsub.f32 1.0, %v346_v21 }
  0xab   :  { %491 = vperm.xlu2 %1057, %v1121_v2   ;;  %v25_v2 = vmul.f32 7.5, %v24_v46  ;;  %v281_v46 = vsub.f32 %v1277_v51, %v1323_v36  ;;  %v356_v59 = vand.u32 2147483647, %v292_v1 }
  0xac   :  { %559 = vperm.xlu1 %1056, %v1186_v16   ;;  %v1404_v11 = vpop.permute.xlu2 %221  ;;  %v276_v16 = vsub.f32 %v1283_v53, %v1298_v0  ;;  %v254_v0 = vsub.f32 %v1283_v53, %v1302_v9  ;;  %1761 = vst [vmem:[#allocation26_spill] sm:$0xff] %v1434_v52  ;;  %v259_v9 = vsub.f32 %v1277_v51, %v1335_v41  ;;  %v1466_v8 = vmax.f32 %v383_v25, 0.0 }
  0xad   :  { %v1410_v48 = vpop.permute.xlu1 %181  ;;  %v1412_v55 = vpop.permute.xlu0 %176  ;;  %v26_v5 = vmax.f32 %v25_v2, 0.0  ;;  %v345_v26 = vand.u32 2147483647, %v281_v46  ;;  %v291_v41 = vsub.f32 %v1277_v51, %v1367_v20  ;;  %1763 = vst [vmem:[#allocation28_spill] sm:$0xff] %v1456_v39  ;;  %v289_v63 = vsub.f32 %v1277_v51, %v1404_v11 }
  0xae   :  { %v340_v17 = vand.u32 2147483647, %v276_v16  ;;  %v318_v15 = vand.u32 2147483647, %v254_v0  ;;  %v381_v0 = vsub.f32 1.0, %v317_v62  ;;  %v267_v62 = vsub.f32 %v1277_v51, %v1369_v27 }
  0xaf   :  { %v27_v16 = vmin.f32 %v26_v5, 15.0  ;;  %v323_v61 = vand.u32 2147483647, %v259_v9  ;;  %v1458_v5 = vmax.f32 %v403_v14, 0.0  ;;  %v409_v60 = vsub.f32 1.0, %v345_v26 }
  0xb0   :  { %v404_v23 = vsub.f32 1.0, %v340_v17  ;;  %v382_v17 = vsub.f32 1.0, %v318_v15  ;;  %v355_v20 = vand.u32 2147483647, %v291_v41  ;;  %v1472_v9 = vmax.f32 %v381_v0, 0.0 }
  0xb1   :  { %1764 = vst [vmem:[#allocation29_spill] sm:$0xff] %v1458_v5  ;;  %v1460_v45 = vperm.slane %v27_v16, 0  ;;  %v1462_v46 = vperm.slane %v27_v16, 1  ;;  %v387_v14 = vsub.f32 1.0, %v323_v61  ;;  %v388_v15 = vsub.f32 1.0, %v324_v6 }
  0xb2   :  { %v1464_v35 = vmax.f32 %v404_v23, 0.0  ;;  %v1476_v16 = vmax.f32 %v382_v17, 0.0  ;;  %v290_v23 = vsub.f32 %v1283_v53, %v1404_v11  ;;  %v1484_v41 = vmax.f32 %v409_v60, 0.0 }
  0xb3   :  { %v1486_v1 = vmax.f32 %v410_v4, 0.0  ;;  %v268_v61 = vsub.f32 %v1283_v53, %v1369_v27  ;;  %v265_v6 = vsub.f32 %v1277_v51, %v1371_v29  ;;  %v1492_v17 = vand.u32 2147483647, %v267_v62 }
  0xb4   :  { %1765 = vst [vmem:[#allocation30_spill] sm:$0xff] %v1464_v35  ;;  %v266_v11 = vsub.f32 %v1283_v53, %v1371_v29  ;;  %v420_v56 = vsub.f32 1.0, %v356_v59  ;;  %v353_v13 = vand.u32 2147483647, %v289_v63  ;;  %v273_v60 = vsub.f32 %v1277_v51, %v1410_v48 }
  0xb5   :  { %v1446_v36 = vpop.permute.xlu1 %196  ;;  %v1448_v2 = vpop.permute.xlu0 %191  ;;  %1766 = vst [vmem:[#allocation31_spill] sm:$0xff] %v1484_v41  ;;  %v1498_v4 = vmax.f32 %v387_v14, 0.0  ;;  %v1500_v12 = vmax.f32 %v388_v15, 0.0  ;;  %v354_v40 = vand.u32 2147483647, %v290_v23 }
  0xb6   :  { %v612_v30 = vpop.permute.xlu2 %611  ;;  %1767 = vst [vmem:[#allocation32_spill] sm:$0xff] %v1486_v1  ;;  %v1504_v52 = vand.u32 2147483647, %v268_v61  ;;  %v1506_v50 = vand.u32 2147483647, %v265_v6  ;;  %v484_v15 = vmax.f32 %v420_v56, 0.0 }
  0xb7   :  { %v678_v25 = vsub.f32 %v1460_v45, %v612_v30  ;;  %v679_v26 = vsub.f32 %v1462_v46, %v612_v30  ;;  %1768 = vst [vmem:[#allocation33_spill] sm:$0xff] %v1492_v17  ;;  %v419_v30 = vsub.f32 1.0, %v355_v20  ;;  %v1511_v63 = vand.u32 2147483647, %v266_v11 }
  0xb8   :  { %v417_v19 = vsub.f32 1.0, %v353_v13  ;;  %v418_v61 = vsub.f32 1.0, %v354_v40 }
  0xb9   :  { %v742_v57 = vand.u32 2147483647, %v678_v25  ;;  %v743_v62 = vand.u32 2147483647, %v679_v26  ;;  %v483_v14 = vmax.f32 %v419_v30, 0.0 }
  0xba   :  { %v1515_v25 = vand.u32 2147483647, %v273_v60  ;;  %v481_v31 = vmax.f32 %v417_v19, 0.0  ;;  %v482_v44 = vmax.f32 %v418_v61, 0.0 }
  0xbb   :  { %v806_v6 = vsub.f32 1.0, %v742_v57  ;;  %v807_v27 = vsub.f32 1.0, %v743_v62  ;;  %v271_v57 = vsub.f32 %v1277_v51, %v1412_v55 }
  0xbd   :  { %v212_v21 = vpop.permute.xlu1 %211  ;;  %v1482_v33 = vpop.permute.xlu0 %206  ;;  %v870_v58 = vmax.f32 %v806_v6, 0.0  ;;  %v871_v42 = vmax.f32 %v807_v27, 0.0 }
  0xbe   :  { %v608_v0 = vpop.permute.xlu2 %607  ;;  %v285_v26 = vsub.f32 %v1277_v51, %v212_v21  ;;  %v286_v47 = vsub.f32 %v1283_v53, %v212_v21 }
  0xbf   :  { %v676_v29 = vsub.f32 %v1460_v45, %v608_v0  ;;  %v677_v20 = vsub.f32 %v1462_v46, %v608_v0 }
  0xc0   :  { %v349_v21 = vand.u32 2147483647, %v285_v26  ;;  %v350_v17 = vand.u32 2147483647, %v286_v47 }
  0xc1   :  { %v740_v28 = vand.u32 2147483647, %v676_v29  ;;  %v741_v59 = vand.u32 2147483647, %v677_v20 }
  0xc2   :  { %v414_v20 = vsub.f32 1.0, %v350_v17 }
  0xc3   :  { %v804_v35 = vsub.f32 1.0, %v740_v28  ;;  %v805_v5 = vsub.f32 1.0, %v741_v59 }
  0xc5   :  { %v217_v0 = vpop.permute.xlu0 %216 }
  0xc6   :  { %v287_v11 = vsub.f32 %v1277_v51, %v217_v0  ;;  %v288_v56 = vsub.f32 %v1283_v53, %v217_v0  ;;  %v604_v13 = vpop.permute.xlu2 %603  ;;  %v616_v30 = vpop.permute.xlu1 %615 }
  0xc7   :  { %v674_v23 = vsub.f32 %v1460_v45, %v604_v13  ;;  %v675_v60 = vsub.f32 %v1462_v46, %v604_v13  ;;  %v680_v24 = vsub.f32 %v1460_v45, %v616_v30  ;;  %v681_v40 = vsub.f32 %v1462_v46, %v616_v30 }
  0xc8   :  { %v351_v62 = vand.u32 2147483647, %v287_v11  ;;  %v352_v29 = vand.u32 2147483647, %v288_v56  ;;  %v413_v11 = vsub.f32 1.0, %v349_v21 }
  0xc9   :  { %v738_v0 = vand.u32 2147483647, %v674_v23  ;;  %v739_v38 = vand.u32 2147483647, %v675_v60  ;;  %v744_v37 = vand.u32 2147483647, %v680_v24 }
  0xca   :  { %v745_v13 = vand.u32 2147483647, %v681_v40  ;;  %v415_v22 = vsub.f32 1.0, %v351_v62  ;;  %v416_v18 = vsub.f32 1.0, %v352_v29  ;;  %v868_v23 = vmax.f32 %v804_v35, 0.0 }
  0xcb   :  { %v808_v30 = vsub.f32 1.0, %v744_v37  ;;  %v802_v56 = vsub.f32 1.0, %v738_v0  ;;  %v803_v1 = vsub.f32 1.0, %v739_v38  ;;  %v869_v60 = vmax.f32 %v805_v5, 0.0 }
  0xcc   :  { %v809_v26 = vsub.f32 1.0, %v745_v13  ;;  %v479_v59 = vmax.f32 %v415_v22, 0.0  ;;  %v480_v19 = vmax.f32 %v416_v18, 0.0  ;;  %v934_v62 = vmul.f32 %v870_v58, %v481_v31 }
  0xcd   :  { %v872_v41 = vmax.f32 %v808_v30, 0.0  ;;  %v866_v17 = vmax.f32 %v802_v56, 0.0  ;;  %v867_v35 = vmax.f32 %v803_v1, 0.0  ;;  %v935_v18 = vmul.f32 %v871_v42, %v482_v44 }
  0xce   :  { %v1529_v24 = vpop.permute.xlu2 %531  ;;  %v548_v47 = vpop.permute.xlu1 %547  ;;  %v873_v28 = vmax.f32 %v809_v26, 0.0  ;;  %v477_v22 = vmax.f32 %v413_v11, 0.0  ;;  %v478_v30 = vmax.f32 %v414_v20, 0.0  ;;  %v396_v1 = vsub.f32 1.0, %v1504_v52 }
  0xcf   :  { %v646_v40 = vsub.f32 %v1460_v45, %v548_v47  ;;  %v647_v37 = vsub.f32 %v1462_v46, %v548_v47  ;;  %v552_v61 = vpop.permute.xlu0 %551  ;;  %v936_v38 = vmul.f32 %v872_v41, %v483_v14  ;;  %v932_v47 = vmul.f32 %v868_v23, %v479_v59 }
  0xd0   :  { %v648_v27 = vsub.f32 %v1460_v45, %v552_v61  ;;  %v649_v6 = vsub.f32 %v1462_v46, %v552_v61  ;;  %v937_v21 = vmul.f32 %v873_v28, %v484_v15  ;;  %v933_v61 = vmul.f32 %v869_v60, %v480_v19 }
  0xd1   :  { %v710_v5 = vand.u32 2147483647, %v646_v40  ;;  %v711_v29 = vand.u32 2147483647, %v647_v37  ;;  %962 = vmatpush.msra.mxu1 %v936_v38  ;;  %v1769_v58 = vsub.f32 %v1283_v53, %v1410_v48  ;;  %v1541_v15 = vand.u32 2147483647, %v271_v57 }
  0xd2   :  { %v712_v0 = vand.u32 2147483647, %v648_v27  ;;  %v713_v13 = vand.u32 2147483647, %v649_v6  ;;  %1002 = vmatpush.msra.mxu3 %v937_v21  ;;  %v930_v42 = vmul.f32 %v866_v17, %v477_v22  ;;  %v931_v56 = vmul.f32 %v867_v35, %v478_v30 }
  0xd3   :  { %v774_v26 = vsub.f32 1.0, %v710_v5  ;;  %v775_v39 = vsub.f32 1.0, %v711_v29  ;;  %963 = vmatpush.msra.mxu1 %v934_v62  ;;  %v1539_v31 = vand.u32 2147483647, %v1769_v58  ;;  %v393_v28 = vsub.f32 1.0, %v1506_v50 }
  0xd4   :  { %1003 = vmatpush.msra.mxu3 %v935_v18  ;;  %v776_v41 = vsub.f32 1.0, %v712_v0  ;;  %v777_v14 = vsub.f32 1.0, %v713_v13  ;;  %v394_v57 = vsub.f32 1.0, %v1511_v63  ;;  %v401_v37 = vsub.f32 1.0, %v1515_v25 }
  0xd5   :  { %v838_v44 = vmax.f32 %v774_v26, 0.0  ;;  %964 = vmatpush.msra.mxu1 %v932_v47  ;;  %v839_v59 = vmax.f32 %v775_v39, 0.0  ;;  %v1770_v27 = vsub.f32 %v1283_v53, %v1412_v55  ;;  %v402_v39 = vsub.f32 1.0, %v1539_v31  ;;  %v1775_v31 = vld [vmem:[#allocation13_spill] sm:$0xff] }
  0xd6   :  { %1004 = vmatpush.msra.mxu3 %v933_v61  ;;  %v528_v20 = vpop.permute.xlu2 %527  ;;  %v544_v11 = vpop.permute.xlu1 %543  ;;  %v840_v23 = vmax.f32 %v776_v41, 0.0  ;;  %v841_v60 = vmax.f32 %v777_v14, 0.0  ;;  %v399_v21 = vsub.f32 1.0, %v1541_v15  ;;  %v638_v0 = vsub.f32 %v1460_v45, %v1529_v24 }
  0xd7   :  { %v644_v19 = vsub.f32 %v1460_v45, %v544_v11  ;;  %v645_v48 = vsub.f32 %v1462_v46, %v544_v11  ;;  %v536_v40 = vpop.permute.xlu0 %535  ;;  %v1551_v6 = vand.u32 2147483647, %v1770_v27  ;;  %965 = vmatpush.msra.mxu1 %v930_v42  ;;  %v902_v55 = vmul.f32 %v838_v44, %v1376_v32 }
  0xd8   :  { %1005 = vmatpush.msra.mxu3 %v931_v56  ;;  %v904_v38 = vmul.f32 %v840_v23, %v1498_v4  ;;  %v905_v35 = vmul.f32 %v841_v60, %v1500_v12  ;;  %v640_v62 = vsub.f32 %v1460_v45, %v536_v40  ;;  %v641_v29 = vsub.f32 %v1462_v46, %v536_v40 }
  0xd9   :  { %v708_v17 = vand.u32 2147483647, %v644_v19  ;;  %v709_v5 = vand.u32 2147483647, %v645_v48  ;;  %v639_v4 = vsub.f32 %v1462_v46, %v1529_v24  ;;  %v903_v18 = vmul.f32 %v839_v59, %v1382_v34 }
  0xda   :  { %942 = vmatpush.msra.mxu0 %v904_v38  ;;  %982 = vmatpush.msra.mxu2 %v905_v35  ;;  %v400_v12 = vsub.f32 1.0, %v1551_v6  ;;  %v279_v22 = vsub.f32 %v1277_v51, %v1446_v36  ;;  %v280_v30 = vsub.f32 %v1283_v53, %v1446_v36  ;;  %v277_v32 = vsub.f32 %v1277_v51, %v1448_v2 }
  0xdb   :  { %v772_v13 = vsub.f32 1.0, %v708_v17  ;;  %v773_v26 = vsub.f32 1.0, %v709_v5  ;;  %v636_v47 = vsub.f32 %v1460_v45, %v528_v20  ;;  %v637_v24 = vsub.f32 %v1462_v46, %v528_v20 }
  0xdc   :  { %943 = vmatpush.msra.mxu0 %v902_v55  ;;  %983 = vmatpush.msra.mxu2 %v903_v18  ;;  %v283_v34 = vsub.f32 %v1277_v51, %v1482_v33  ;;  %v704_v14 = vand.u32 2147483647, %v640_v62  ;;  %v705_v58 = vand.u32 2147483647, %v641_v29  ;;  %v702_v44 = vand.u32 2147483647, %v638_v0 }
  0xdd   :  { %v836_v61 = vmax.f32 %v772_v13, 0.0  ;;  %v837_v41 = vmax.f32 %v773_v26, 0.0  ;;  %v703_v11 = vand.u32 2147483647, %v639_v4  ;;  %v1582_v20 = vand.u32 2147483647, %v279_v22 }
  0xde   :  { %v1576_v42 = vpop.permute.xlu2 %587  ;;  %v540_v36 = vpop.permute.xlu1 %539  ;;  %v278_v59 = vsub.f32 %v1283_v53, %v1448_v2  ;;  %v284_v40 = vsub.f32 %v1283_v53, %v1482_v33  ;;  %v700_v27 = vand.u32 2147483647, %v636_v47  ;;  %v701_v38 = vand.u32 2147483647, %v637_v24 }
  0xdf   :  { %v642_v56 = vsub.f32 %v1460_v45, %v540_v36  ;;  %v643_v23 = vsub.f32 %v1462_v46, %v540_v36  ;;  %v1580_v60 = vpop.permute.xlu0 %591  ;;  %v900_v19 = vmul.f32 %v836_v61, %v1466_v8  ;;  %v901_v48 = vmul.f32 %v837_v41, %v1468_v43 }
  0xe0   :  { %v347_v35 = vand.u32 2147483647, %v283_v34  ;;  %v768_v5 = vsub.f32 1.0, %v704_v14  ;;  %v769_v62 = vsub.f32 1.0, %v705_v58  ;;  %v1590_v55 = vand.u32 2147483647, %v280_v30 }
  0xe1   :  { %v706_v17 = vand.u32 2147483647, %v642_v56  ;;  %v707_v29 = vand.u32 2147483647, %v643_v23  ;;  %944 = vmatpush.msra.mxu0 %v900_v19  ;;  %984 = vmatpush.msra.mxu2 %v901_v48  ;;  %v766_v0 = vsub.f32 1.0, %v702_v44  ;;  %v767_v2 = vsub.f32 1.0, %v703_v11 }
  0xe2   :  { %v407_v8 = vsub.f32 1.0, %v1582_v20  ;;  %v1593_v43 = vand.u32 2147483647, %v277_v32  ;;  %v1595_v13 = vand.u32 2147483647, %v278_v59  ;;  %v764_v22 = vsub.f32 1.0, %v700_v27 }
  0xe3   :  { %v770_v4 = vsub.f32 1.0, %v706_v17  ;;  %v771_v33 = vsub.f32 1.0, %v707_v29  ;;  %v348_v18 = vand.u32 2147483647, %v284_v40  ;;  %v765_v26 = vsub.f32 1.0, %v701_v38 }
  0xe4   :  { %v411_v24 = vsub.f32 1.0, %v347_v35  ;;  %v832_v61 = vmax.f32 %v768_v5, 0.0  ;;  %v833_v34 = vmax.f32 %v769_v62, 0.0  ;;  %v830_v14 = vmax.f32 %v766_v0, 0.0 }
  0xe5   :  { %v834_v47 = vmax.f32 %v770_v4, 0.0  ;;  %v835_v41 = vmax.f32 %v771_v33, 0.0  ;;  %v831_v58 = vmax.f32 %v767_v2, 0.0  ;;  %v666_v56 = vsub.f32 %v1460_v45, %v1576_v42 }
  0xe6   :  { %v600_v30 = vpop.permute.xlu1 %599  ;;  %v1597_v36 = vpop.permute.xlu2 %515  ;;  %v668_v23 = vsub.f32 %v1460_v45, %v1580_v60  ;;  %v828_v48 = vmax.f32 %v764_v22, 0.0  ;;  %v829_v40 = vmax.f32 %v765_v26, 0.0  ;;  %v669_v27 = vsub.f32 %v1462_v46, %v1580_v60 }
  0xe7   :  { %v672_v44 = vsub.f32 %v1460_v45, %v600_v30  ;;  %v673_v32 = vsub.f32 %v1462_v46, %v600_v30  ;;  %v1601_v11 = vpop.permute.xlu0 %519  ;;  %v898_v59 = vmul.f32 %v834_v47, %v1472_v9  ;;  %v899_v19 = vmul.f32 %v835_v41, %v1476_v16 }
  0xe8   :  { %v667_v17 = vsub.f32 %v1462_v46, %v1576_v42  ;;  %v896_v5 = vmul.f32 %v832_v61, %v1349_v7  ;;  %v897_v62 = vmul.f32 %v833_v34, %v1351_v10  ;;  %v408_v9 = vsub.f32 1.0, %v1590_v55 }
  0xe9   :  { %v736_v38 = vand.u32 2147483647, %v672_v44  ;;  %v737_v35 = vand.u32 2147483647, %v673_v32  ;;  %945 = vmatpush.msra.mxu0 %v898_v59  ;;  %985 = vmatpush.msra.mxu2 %v899_v19  ;;  %v412_v29 = vsub.f32 1.0, %v348_v18  ;;  %v894_v0 = vmul.f32 %v830_v14, %v1438_v54  ;;  %v1771_v54 = vld [vmem:[#allocation28_spill] sm:$0xff] }
  0xea   :  { %v730_v2 = vand.u32 2147483647, %v666_v56  ;;  %v732_v4 = vand.u32 2147483647, %v668_v23  ;;  %v895_v42 = vmul.f32 %v831_v58, %v1444_v3  ;;  %v405_v33 = vsub.f32 1.0, %v1593_v43 }
  0xeb   :  { %v800_v16 = vsub.f32 1.0, %v736_v38  ;;  %v801_v60 = vsub.f32 1.0, %v737_v35  ;;  %946 = vmatpush.msra.mxu0 %v896_v5  ;;  %986 = vmatpush.msra.mxu2 %v897_v62  ;;  %v475_v22 = vmax.f32 %v411_v24, 0.0  ;;  %v733_v26 = vand.u32 2147483647, %v669_v27 }
  0xec   :  { %v731_v47 = vand.u32 2147483647, %v667_v17  ;;  %v892_v18 = vmul.f32 %v828_v48, %v1450_v49  ;;  %v893_v61 = vmul.f32 %v829_v40, %v1771_v54  ;;  %v406_v34 = vsub.f32 1.0, %v1595_v13  ;;  %v1773_v54 = vld [vmem:[#allocation32_spill] sm:$0xff] }
  0xed   :  { %v864_v7 = vmax.f32 %v800_v16, 0.0  ;;  %v865_v10 = vmax.f32 %v801_v60, 0.0  ;;  %947 = vmatpush.msra.mxu0 %v894_v0  ;;  %987 = vmatpush.msra.mxu2 %v895_v42  ;;  %v476_v41 = vmax.f32 %v412_v29, 0.0  ;;  %v794_v24 = vsub.f32 1.0, %v730_v2 }
  0xee   :  { %v596_v55 = vpop.permute.xlu1 %595  ;;  %v796_v14 = vsub.f32 1.0, %v732_v4  ;;  %v632_v58 = vsub.f32 %v1460_v45, %v1601_v11  ;;  %v797_v32 = vsub.f32 1.0, %v733_v26  ;;  %v630_v49 = vsub.f32 %v1460_v45, %v1597_v36  ;;  %v576_v56 = vpop.permute.xlu2 %575 }
  0xef   :  { %v670_v30 = vsub.f32 %v1460_v45, %v596_v55  ;;  %v671_v3 = vsub.f32 %v1462_v46, %v596_v55  ;;  %v580_v43 = vpop.permute.xlu0 %579  ;;  %948 = vmatpush.msra.mxu0 %v892_v18  ;;  %988 = vmatpush.msra.mxu2 %v893_v61  ;;  %v928_v44 = vmul.f32 %v864_v7, %v475_v22  ;;  %v795_v59 = vsub.f32 1.0, %v731_v47  ;;  %v1772_v55 = vld [vmem:[#allocation31_spill] sm:$0xff] }
  0xf0   :  { %v929_v23 = vmul.f32 %v865_v10, %v476_v41  ;;  %v631_v19 = vsub.f32 %v1462_v46, %v1597_v36  ;;  %v633_v48 = vsub.f32 %v1462_v46, %v1601_v11  ;;  %v471_v27 = vmax.f32 %v407_v8, 0.0 }
  0xf1   :  { %v734_v13 = vand.u32 2147483647, %v670_v30  ;;  %v735_v40 = vand.u32 2147483647, %v671_v3  ;;  %966 = vmatpush.msra.mxu1 %v928_v44  ;;  %v472_v38 = vmax.f32 %v408_v9, 0.0  ;;  %v469_v17 = vmax.f32 %v405_v33, 0.0 }
  0xf2   :  { %1006 = vmatpush.msra.mxu3 %v929_v23  ;;  %v470_v5 = vmax.f32 %v406_v34, 0.0  ;;  %v858_v62 = vmax.f32 %v794_v24, 0.0  ;;  %v696_v29 = vand.u32 2147483647, %v632_v58  ;;  %v860_v0 = vmax.f32 %v796_v14, 0.0 }
  0xf3   :  { %v798_v35 = vsub.f32 1.0, %v734_v13  ;;  %v799_v16 = vsub.f32 1.0, %v735_v40  ;;  %v861_v2 = vmax.f32 %v797_v32, 0.0  ;;  %v694_v4 = vand.u32 2147483647, %v630_v49 }
  0xf4   :  { %v859_v60 = vmax.f32 %v795_v59, 0.0  ;;  %v695_v42 = vand.u32 2147483647, %v631_v19  ;;  %v697_v11 = vand.u32 2147483647, %v633_v48  ;;  %v662_v20 = vsub.f32 %v1460_v45, %v580_v43 }
  0xf5   :  { %v862_v36 = vmax.f32 %v798_v35, 0.0  ;;  %v863_v22 = vmax.f32 %v799_v16, 0.0  ;;  %v663_v8 = vsub.f32 %v1462_v46, %v580_v43  ;;  %v760_v7 = vsub.f32 1.0, %v696_v29 }
  0xf6   :  { %v524_v26 = vpop.permute.xlu1 %523  ;;  %v660_v47 = vsub.f32 %v1460_v45, %v576_v56  ;;  %v661_v34 = vsub.f32 %v1462_v46, %v576_v56  ;;  %v924_v30 = vmul.f32 %v860_v0, %v471_v27  ;;  %v925_v3 = vmul.f32 %v861_v2, %v472_v38  ;;  %v504_v49 = vpop.permute.xlu2 %503 }
  0xf7   :  { %v634_v9 = vsub.f32 %v1460_v45, %v524_v26  ;;  %v635_v33 = vsub.f32 %v1462_v46, %v524_v26  ;;  %v1639_v10 = vpop.permute.xlu0 %507  ;;  %v926_v18 = vmul.f32 %v862_v36, %v1772_v55  ;;  %v927_v61 = vmul.f32 %v863_v22, %v1773_v54  ;;  %v1777_v55 = vld [vmem:[#allocation23_spill] sm:$0xff] }
  0xf8   :  { %v758_v24 = vsub.f32 1.0, %v694_v4  ;;  %v759_v43 = vsub.f32 1.0, %v695_v42  ;;  %v761_v14 = vsub.f32 1.0, %v697_v11  ;;  %v726_v44 = vand.u32 2147483647, %v662_v20  ;;  %v1776_v42 = vld [vmem:[#allocation22_spill] sm:$0xff] }
  0xf9   :  { %v698_v41 = vand.u32 2147483647, %v634_v9  ;;  %v699_v58 = vand.u32 2147483647, %v635_v33  ;;  %967 = vmatpush.msra.mxu1 %v926_v18  ;;  %1007 = vmatpush.msra.mxu3 %v927_v61  ;;  %v727_v32 = vand.u32 2147483647, %v663_v8  ;;  %v922_v23 = vmul.f32 %v858_v62, %v469_v17 }
  0xfa   :  { %v824_v59 = vmax.f32 %v760_v7, 0.0  ;;  %v724_v19 = vand.u32 2147483647, %v660_v47  ;;  %v923_v56 = vmul.f32 %v859_v60, %v470_v5  ;;  %v465_v40 = vmax.f32 %v401_v37, 0.0  ;;  %v1774_v37 = vld [vmem:[#allocation12_spill] sm:$0xff] }
  0xfb   :  { %v762_v13 = vsub.f32 1.0, %v698_v41  ;;  %v763_v48 = vsub.f32 1.0, %v699_v58  ;;  %968 = vmatpush.msra.mxu1 %v924_v30  ;;  %1008 = vmatpush.msra.mxu3 %v925_v3  ;;  %v466_v27 = vmax.f32 %v402_v39, 0.0  ;;  %v725_v38 = vand.u32 2147483647, %v661_v34  ;;  %v1778_v3 = vld [vmem:[#allocation24_spill] sm:$0xff] }
  0xfc   :  { %v822_v29 = vmax.f32 %v758_v24, 0.0  ;;  %v823_v16 = vmax.f32 %v759_v43, 0.0  ;;  %v825_v0 = vmax.f32 %v761_v14, 0.0  ;;  %v790_v62 = vsub.f32 1.0, %v726_v44  ;;  %v1779_v43 = vld [vmem:[#allocation25_spill] sm:$0xff] }
  0xfd   :  { %v826_v35 = vmax.f32 %v762_v13, 0.0  ;;  %v827_v2 = vmax.f32 %v763_v48, 0.0  ;;  %969 = vmatpush.msra.mxu1 %v922_v23  ;;  %1009 = vmatpush.msra.mxu3 %v923_v56  ;;  %v791_v4 = vsub.f32 1.0, %v727_v32  ;;  %v788_v25 = vsub.f32 1.0, %v724_v19 }
  0xfe   :  { %v584_v17 = vpop.permute.xlu1 %583  ;;  %v888_v11 = vmul.f32 %v824_v59, %v1776_v42  ;;  %v789_v22 = vsub.f32 1.0, %v725_v38  ;;  %v626_v26 = vsub.f32 %v1460_v45, %v1639_v10  ;;  %v627_v20 = vsub.f32 %v1462_v46, %v1639_v10 }
  0xff   :  { %v664_v36 = vsub.f32 %v1460_v45, %v584_v17  ;;  %v665_v5 = vsub.f32 %v1462_v46, %v584_v17  ;;  %v890_v60 = vmul.f32 %v826_v35, %v1774_v37  ;;  %v891_v39 = vmul.f32 %v827_v2, %v1775_v31  ;;  %v568_v47 = vpop.permute.xlu0 %567 }
 0x100   :  { %v624_v9 = vsub.f32 %v1460_v45, %v504_v49  ;;  %v625_v33 = vsub.f32 %v1462_v46, %v504_v49  ;;  %v889_v18 = vmul.f32 %v825_v0, %v1777_v55  ;;  %v463_v54 = vmax.f32 %v399_v21, 0.0  ;;  %v564_v49 = vpop.permute.xlu2 %563  ;;  %v1781_v0 = vld [vmem:[#allocation30_spill] sm:$0xff] }
 0x101   :  { %v728_v8 = vand.u32 2147483647, %v664_v36  ;;  %v729_v7 = vand.u32 2147483647, %v665_v5  ;;  %949 = vmatpush.msra.mxu0 %v890_v60  ;;  %989 = vmatpush.msra.mxu2 %v891_v39  ;;  %v854_v61 = vmax.f32 %v790_v62, 0.0  ;;  %v855_v34 = vmax.f32 %v791_v4, 0.0 }
 0x102   :  { %v464_v10 = vmax.f32 %v400_v12, 0.0  ;;  %v886_v24 = vmul.f32 %v822_v29, %v1778_v3  ;;  %v887_v14 = vmul.f32 %v823_v16, %v1779_v43  ;;  %v852_v58 = vmax.f32 %v788_v25, 0.0  ;;  %v1780_v29 = vld [vmem:[#allocation29_spill] sm:$0xff] }
 0x103   :  { %v792_v41 = vsub.f32 1.0, %v728_v8  ;;  %v793_v30 = vsub.f32 1.0, %v729_v7  ;;  %950 = vmatpush.msra.mxu0 %v888_v11  ;;  %990 = vmatpush.msra.mxu2 %v889_v18  ;;  %v690_v44 = vand.u32 2147483647, %v626_v26  ;;  %v691_v32 = vand.u32 2147483647, %v627_v20 }
 0x104   :  { %v853_v15 = vmax.f32 %v789_v22, 0.0  ;;  %v688_v21 = vand.u32 2147483647, %v624_v9  ;;  %v689_v23 = vand.u32 2147483647, %v625_v33  ;;  %v918_v48 = vmul.f32 %v854_v61, %v465_v40  ;;  %v1782_v40 = vld [vmem:[#allocation33_spill] sm:$0xff] }
 0x105   :  { %v856_v13 = vmax.f32 %v792_v41, 0.0  ;;  %v857_v59 = vmax.f32 %v793_v30, 0.0  ;;  %951 = vmatpush.msra.mxu0 %v886_v24  ;;  %991 = vmatpush.msra.mxu2 %v887_v14  ;;  %v919_v56 = vmul.f32 %v855_v34, %v466_v27  ;;  %v656_v38 = vsub.f32 %v1460_v45, %v568_v47  ;;  %v1784_v24 = vld [vmem:[#allocation9_spill] sm:$0xff] }
 0x106   :  { %v512_v6 = vpop.permute.xlu1 %511  ;;  %v657_v35 = vsub.f32 %v1462_v46, %v568_v47  ;;  %v754_v17 = vsub.f32 1.0, %v690_v44  ;;  %v755_v62 = vsub.f32 1.0, %v691_v32  ;;  %v752_v5 = vsub.f32 1.0, %v688_v21 }
 0x107   :  { %v628_v12 = vsub.f32 %v1460_v45, %v512_v6  ;;  %v629_v19 = vsub.f32 %v1462_v46, %v512_v6  ;;  %v920_v16 = vmul.f32 %v856_v13, %v1780_v29  ;;  %v921_v2 = vmul.f32 %v857_v59, %v1781_v0  ;;  %v496_v20 = vpop.permute.xlu0 %495 }
 0x108   :  { %v753_v25 = vsub.f32 1.0, %v689_v23  ;;  %v654_v37 = vsub.f32 %v1460_v45, %v564_v49  ;;  %v655_v60 = vsub.f32 %v1462_v46, %v564_v49  ;;  %v1783_v27 = vsub.f32 1.0, %v1782_v40  ;;  %v1787_v23 = vld [vmem:[#allocation8_spill] sm:$0xff] }
 0x109   :  { %v692_v4 = vand.u32 2147483647, %v628_v12  ;;  %v693_v36 = vand.u32 2147483647, %v629_v19  ;;  %970 = vmatpush.msra.mxu1 %v920_v16  ;;  %1010 = vmatpush.msra.mxu3 %v921_v2  ;;  %v1680_v39 = vmax.f32 %v396_v1, 0.0  ;;  %v916_v8 = vmul.f32 %v852_v58, %v463_v54  ;;  %v492_v1 = vpop.permute.xlu2 %491  ;;  %v1785_v54 = vld [vmem:[#allocation10_spill] sm:$0xff] }
 0x10a   :  { %v1676_v31 = vmax.f32 %v1783_v27, 0.0  ;;  %v720_v22 = vand.u32 2147483647, %v656_v38  ;;  %v721_v26 = vand.u32 2147483647, %v657_v35  ;;  %v917_v9 = vmul.f32 %v853_v15, %v464_v10  ;;  %v1786_v15 = vld [vmem:[#allocation7_spill] sm:$0xff] }
 0x10b   :  { %v756_v42 = vsub.f32 1.0, %v692_v4  ;;  %v757_v11 = vsub.f32 1.0, %v693_v36  ;;  %971 = vmatpush.msra.mxu1 %v918_v48  ;;  %1011 = vmatpush.msra.mxu3 %v919_v56  ;;  %v818_v33 = vmax.f32 %v754_v17, 0.0  ;;  %v819_v7 = vmax.f32 %v755_v62, 0.0  ;;  %v1788_v35 = vld [vmem:[#allocation18_spill] sm:$0xff]  ;;  %v1789_v16 = vld [vmem:[#allocation19_spill] sm:$0xff] }
 0x10c   :  { %v816_v18 = vmax.f32 %v752_v5, 0.0  ;;  %v817_v61 = vmax.f32 %v753_v25, 0.0  ;;  %v718_v34 = vand.u32 2147483647, %v654_v37  ;;  %v719_v41 = vand.u32 2147483647, %v655_v60 }
 0x10d   :  { %v820_v47 = vmax.f32 %v756_v42, 0.0  ;;  %v821_v55 = vmax.f32 %v757_v11, 0.0  ;;  %972 = vmatpush.msra.mxu1 %v916_v8  ;;  %1012 = vmatpush.msra.mxu3 %v917_v9  ;;  %v784_v14 = vsub.f32 1.0, %v720_v22  ;;  %v785_v58 = vsub.f32 1.0, %v721_v26  ;;  %v1790_v8 = vld [vmem:[#allocation26_spill] sm:$0xff] }
 0x10e   :  { %v572_v52 = vpop.permute.xlu1 %571  ;;  %v620_v44 = vsub.f32 %v1460_v45, %v496_v20  ;;  %v621_v32 = vsub.f32 %v1462_v46, %v496_v20  ;;  %v882_v21 = vmul.f32 %v818_v33, %v1786_v15  ;;  %v883_v59 = vmul.f32 %v819_v7, %v1787_v23 }
 0x10f   :  { %v658_v30 = vsub.f32 %v1460_v45, %v572_v52  ;;  %v659_v3 = vsub.f32 %v1462_v46, %v572_v52  ;;  %v884_v43 = vmul.f32 %v820_v47, %v1784_v24  ;;  %v885_v10 = vmul.f32 %v821_v55, %v1785_v54  ;;  %v556_v11 = vpop.permute.xlu0 %555 }
 0x110   :  { %v782_v6 = vsub.f32 1.0, %v718_v34  ;;  %v783_v12 = vsub.f32 1.0, %v719_v41  ;;  %v618_v19 = vsub.f32 %v1460_v45, %v492_v1  ;;  %v619_v48 = vsub.f32 %v1462_v46, %v492_v1  ;;  %v1792_v34 = vld [vmem:[#allocation11_spill] sm:$0xff] }
 0x111   :  { %v722_v49 = vand.u32 2147483647, %v658_v30  ;;  %v723_v13 = vand.u32 2147483647, %v659_v3  ;;  %952 = vmatpush.msra.mxu0 %v884_v43  ;;  %992 = vmatpush.msra.mxu2 %v885_v10  ;;  %v880_v29 = vmul.f32 %v816_v18, %v1788_v35  ;;  %v881_v0 = vmul.f32 %v817_v61, %v1789_v16  ;;  %v1793_v43 = vld [vmem:[#allocation6_spill] sm:$0xff] }
 0x112   :  { %v848_v2 = vmax.f32 %v784_v14, 0.0  ;;  %v849_v17 = vmax.f32 %v785_v58, 0.0  ;;  %v684_v62 = vand.u32 2147483647, %v620_v44  ;;  %v685_v4 = vand.u32 2147483647, %v621_v32 }
 0x113   :  { %v786_v56 = vsub.f32 1.0, %v722_v49  ;;  %v787_v38 = vsub.f32 1.0, %v723_v13  ;;  %953 = vmatpush.msra.mxu0 %v882_v21  ;;  %993 = vmatpush.msra.mxu2 %v883_v59  ;;  %v457_v36 = vmax.f32 %v393_v28, 0.0  ;;  %v458_v5 = vmax.f32 %v394_v57, 0.0  ;;  %v1791_v28 = vld [vmem:[#allocation27_spill] sm:$0xff] }
 0x114   :  { %v846_v60 = vmax.f32 %v782_v6, 0.0  ;;  %v847_v40 = vmax.f32 %v783_v12, 0.0  ;;  %v682_v27 = vand.u32 2147483647, %v618_v19  ;;  %v683_v42 = vand.u32 2147483647, %v619_v48 }
 0x115   :  { %v850_v25 = vmax.f32 %v786_v56, 0.0  ;;  %v851_v37 = vmax.f32 %v787_v38, 0.0  ;;  %954 = vmatpush.msra.mxu0 %v880_v29  ;;  %994 = vmatpush.msra.mxu2 %v881_v0  ;;  %v748_v63 = vsub.f32 1.0, %v684_v62  ;;  %v749_v57 = vsub.f32 1.0, %v685_v4  ;;  %v1796_v56 = vld [vmem:[#allocation14_spill] sm:$0xff]  ;;  %v1797_v38 = vld [vmem:[#allocation15_spill] sm:$0xff] }
 0x116   :  { %v500_v22 = vpop.permute.xlu1 %499  ;;  %v912_v33 = vmul.f32 %v848_v2, %v1676_v31  ;;  %v913_v7 = vmul.f32 %v849_v17, %v1680_v39  ;;  %v650_v47 = vsub.f32 %v1460_v45, %v556_v11  ;;  %v651_v55 = vsub.f32 %v1462_v46, %v556_v11  ;;  %v1798_v0 = vld [vmem:[#allocation20_spill] sm:$0xff]  ;;  %v1799_v17 = vld [vmem:[#allocation21_spill] sm:$0xff] }
 0x117   :  { %v622_v26 = vsub.f32 %v1460_v45, %v500_v22  ;;  %v623_v20 = vsub.f32 %v1462_v46, %v500_v22  ;;  %v914_v50 = vmul.f32 %v850_v25, %v1790_v8  ;;  %v915_v9 = vmul.f32 %v851_v37, %v1791_v28  ;;  %v940_v22 = vld [vmem:[%s1735_s2] sm:$0xff] }
 0x118   :  { %v261_v41 = vsub.f32 %v1277_v51, %v1792_v34  ;;  %v262_v52 = vsub.f32 %v1283_v53, %v1792_v34  ;;  %v746_v1 = vsub.f32 1.0, %v682_v27  ;;  %v747_v30 = vsub.f32 1.0, %v683_v42  ;;  %v1801_v42 = vld [vmem:[#allocation17_spill] sm:$0xff] }
 0x119   :  { %v686_v18 = vand.u32 2147483647, %v622_v26  ;;  %v687_v61 = vand.u32 2147483647, %v623_v20  ;;  %973 = vmatpush.msra.mxu1 %v914_v50  ;;  %1013 = vmatpush.msra.mxu3 %v915_v9  ;;  %v910_v39 = vmul.f32 %v846_v60, %v457_v36  ;;  %v911_v24 = vmul.f32 %v847_v40, %v458_v5  ;;  %v1800_v40 = vld [vmem:[#allocation16_spill] sm:$0xff] }
 0x11a   :  { %v1794_v54 = vsub.f32 %v1277_v51, %v1793_v43  ;;  %v1795_v14 = vsub.f32 %v1283_v53, %v1793_v43  ;;  %v812_v44 = vmax.f32 %v748_v63, 0.0  ;;  %v813_v32 = vmax.f32 %v749_v57, 0.0 }
 0x11b   :  { %v750_v3 = vsub.f32 1.0, %v686_v18  ;;  %v751_v31 = vsub.f32 1.0, %v687_v61  ;;  %974 = vmatpush.msra.mxu1 %v912_v33  ;;  %1014 = vmatpush.msra.mxu3 %v913_v7  ;;  %v714_v49 = vand.u32 2147483647, %v650_v47  ;;  %v715_v13 = vand.u32 2147483647, %v651_v55 }
 0x11c   :  { %v327_v10 = vand.u32 2147483647, %v1794_v54  ;;  %v328_v58 = vand.u32 2147483647, %v1795_v14  ;;  %v325_v23 = vand.u32 2147483647, %v261_v41  ;;  %v876_v2 = vmul.f32 %v812_v44, %v1798_v0 }
 0x11d   :  { %v814_v15 = vmax.f32 %v750_v3, 0.0  ;;  %v815_v21 = vmax.f32 %v751_v31, 0.0  ;;  %975 = vmatpush.msra.mxu1 %v910_v39  ;;  %1015 = vmatpush.msra.mxu3 %v911_v24  ;;  %v326_v59 = vand.u32 2147483647, %v262_v52  ;;  %v810_v6 = vmax.f32 %v746_v1, 0.0  ;;  %v941_v18 = vld [vmem:[%s1735_s2 + $0x8] sm:$0xff] }
 0x11e   :  { %v811_v12 = vmax.f32 %v747_v30, 0.0  ;;  %v560_v19 = vpop.permute.xlu1 %559  ;;  %v391_v29 = vsub.f32 1.0, %v327_v10  ;;  %v392_v16 = vsub.f32 1.0, %v328_v58  ;;  %v877_v62 = vmul.f32 %v813_v32, %v1799_v17 }
 0x11f   :  { %v652_v51 = vsub.f32 %v1460_v45, %v560_v19  ;;  %v653_v48 = vsub.f32 %v1462_v46, %v560_v19  ;;  %v878_v53 = vmul.f32 %v814_v15, %v1796_v56  ;;  %v879_v35 = vmul.f32 %v815_v21, %v1797_v38 }
 0x120   :  { %v778_v4 = vsub.f32 1.0, %v714_v49  ;;  %v779_v36 = vsub.f32 1.0, %v715_v13  ;;  %v389_v37 = vsub.f32 1.0, %v325_v23  ;;  %v390_v45 = vsub.f32 1.0, %v326_v59 }
 0x121   :  { %v716_v5 = vand.u32 2147483647, %v652_v51  ;;  %v717_v25 = vand.u32 2147483647, %v653_v48  ;;  %955 = vmatpush.msra.mxu0 %v878_v53  ;;  %995 = vmatpush.msra.mxu2 %v879_v35  ;;  %v874_v27 = vmul.f32 %v810_v6, %v1800_v40  ;;  %v875_v11 = vmul.f32 %v811_v12, %v1801_v42 }
 0x122   :  { %v455_v26 = vmax.f32 %v391_v29, 0.0  ;;  %v456_v20 = vmax.f32 %v392_v16, 0.0  ;;  %v842_v8 = vmax.f32 %v778_v4, 0.0  ;;  %v843_v50 = vmax.f32 %v779_v36, 0.0 }
 0x123   :  { %v780_v60 = vsub.f32 1.0, %v716_v5  ;;  %v781_v46 = vsub.f32 1.0, %v717_v25  ;;  %956 = vmatpush.msra.mxu0 %v876_v2  ;;  %996 = vmatpush.msra.mxu2 %v877_v62  ;;  %v453_v63 = vmax.f32 %v389_v37, 0.0  ;;  %v454_v57 = vmax.f32 %v390_v45, 0.0 }
 0x125   :  { %v844_v28 = vmax.f32 %v780_v60, 0.0  ;;  %v845_v9 = vmax.f32 %v781_v46, 0.0  ;;  %957 = vmatpush.msra.mxu0 %v874_v27  ;;  %997 = vmatpush.msra.mxu2 %v875_v11  ;;  %v906_v47 = vmul.f32 %v842_v8, %v453_v63  ;;  %v907_v55 = vmul.f32 %v843_v50, %v454_v57 }
 0x126   :  { %998 = vmatmul.f32.vlgmr.msra.gmra.mxu2 %v940_v22  ;;  %958 = vmatmul.f32.vlgmr.msra.gmra.mxu0 %v940_v22 }
 0x127   :  { %v908_v33 = vmul.f32 %v844_v28, %v455_v26  ;;  %v909_v7 = vmul.f32 %v845_v9, %v456_v20 }
 0x129   :  { %976 = vmatpush.msra.mxu1 %v908_v33  ;;  %1016 = vmatpush.msra.mxu3 %v909_v7 }
 0x12b   :  { %977 = vmatpush.msra.mxu1 %v906_v47  ;;  %1017 = vmatpush.msra.mxu3 %v907_v55 }
 0x12c   :  { %1018 = vmatmul.f32.vlgmr.msra.gmra.mxu3 %v941_v18  ;;  %978 = vmatmul.f32.vlgmr.msra.gmra.mxu1 %v941_v18 }
 0x1a3   :  { %v959_v61 = vpop.f32.mrf.mxu0 }
 0x1a9   :  { %v979_v34 = vpop.f32.mrf.mxu1  ;;  %v999_v52 = vpop.f32.mrf.mxu2 }
 0x1aa   :  { %v980_v41 = vadd.f32 %v979_v34, %v959_v61 }
 0x1ac   :  { %1031 = vst [vmem:[#allocation3] sm:$0xff] %v980_v41 }
 0x1af   :  { %v1019_v1 = vpop.f32.mrf.mxu3 }
 0x1b0   :  { %v1020_v30 = vadd.f32 %v1019_v1, %v999_v52 }
 0x1b2   :  { %1032 = vst [vmem:[#allocation3 + $0x8] sm:$0xff] %v1020_v30 }
 0x1b3   :  { %1043 = dma.vmem_to_hbm [thread:$0]  %s1039_s29, 256, %s1041_s5, [#allocation4]  }
 0x1b4   :  { %1083 = dma.done.wait [#allocation4], 256  }
 0x1b5   :  { %1084 = vsyncadd [#allocation4], 4294967040 }
 0x1b6   :  { %1048 = vsyncpa [#allocation4], 1 }

</bundles_post_ra>
